<compile_context>
chip_gen: v7x
topology: tpu7x:2x2x1
jax: 0.10.0
libtpu: 0.0.40
codegen_flags: <defaults>
</compile_context>

<pallas_src>
import jax
import jax.numpy as jnp
import numpy as np
from jax import lax
from jax.experimental import pallas as pl
from jax.experimental.pallas import tpu as pltpu

KH, KW = 3, 3  # super-kernel spatial size (padding = 1, stride = 1)


# ---------------------------------------------------------------------------
# Pallas kernel
# ---------------------------------------------------------------------------
def _im2col_conv_kernel(x_ref, w_ref, b_ref, o_ref):
    """3x3 'SAME' conv as ONE MXU matmul in lane-folded layout.

    x_ref: (N, H, W*Cin)          f32   lane-dense activations (no pad/halo)
    w_ref: (KH*W*Cin, W*Cout)     bf16  folded super-kernel weight; K rows are
                                        ordered (ki, wi, ci) with the kj taps
                                        and the 'SAME' W zero-padding baked in
    b_ref: (1, W*Cout)            f32   bias replicated over W
    o_ref: (N, H, W*Cout)         f32   lane-dense output
    """
    N, H, WCin = x_ref.shape
    WCout = o_ref.shape[-1]

    x = x_ref[...]                                           # (N, H, WCin)
    zrow = jnp.zeros((N, 1, WCin), x.dtype)
    # Vertical-tap im2col: tap ki of a 3x3 'SAME' conv reads input row h+ki-1.
    # Shifts are per-batch along H with a zero boundary row (H zero-padding).
    x_dn = jnp.concatenate([zrow, x[:, :H - 1, :]], axis=1)  # row h -> x[h-1]
    x_up = jnp.concatenate([x[:, 1:, :], zrow], axis=1)      # row h -> x[h+1]
    xi = jnp.concatenate([x_dn, x, x_up], axis=-1)           # (N, H, 3*WCin)

    # Single batched matmul: M = N*H, K = 3*W*Cin, Nout = W*Cout.
    xi = xi.reshape(N * H, KH * WCin).astype(w_ref.dtype)    # bf16 MXU operand
    acc = jnp.dot(xi, w_ref[...], preferred_element_type=jnp.float32)
    acc = acc + b_ref[...]                                   # broadcast bias
    o_ref[...] = acc.reshape(N, H, WCout).astype(o_ref.dtype)


# ---------------------------------------------------------------------------
# Wrapper glue (weight-side only; no activation padding / im2col in HBM)
# ---------------------------------------------------------------------------
def _fold_weight_im2col(w_eff, W):
    """(KH, KW, Cin, Cout) -> (KH*W*Cin, W*Cout) block-banded, tap-stacked weight.

    big[ki, wi, ci, w, co] = w_eff[ki, kj, ci, co] for wi = w + kj - 1, zero
    when wi falls outside [0, W) (i.e. 'SAME' W-padding baked in).  Built with
    a single einsum against a constant shift tensor.
    """
    kh, kw, Cin, Cout = w_eff.shape
    if (kh, kw) != (KH, KW):
        raise ValueError("im2col fold assumes a 3x3, stride-1, 'SAME' conv")
    wi = np.arange(W)[None, :, None]
    wo = np.arange(W)[None, None, :]
    kj = np.arange(kw)[:, None, None]
    # S[kj, wi, w] = 1 iff wi == w + kj - 1  (constant, folded at trace time)
    S = jnp.asarray((wi == wo + (kj - kw // 2)).astype(np.float32),
                    dtype=w_eff.dtype)
    big = jnp.einsum("jab,ijcd->iacbd", S, w_eff)   # (KH, W, Cin, W, Cout)
    return big.reshape(kh * W * Cin, W * Cout)


def _sliced_conv_pallas(x_nhwc, w_eff, b_eff, *, compute_dtype=jnp.bfloat16,
                        out_dtype=jnp.float32):
    """Run the effective super-kernel 3x3 conv with the Pallas kernel."""
    N, H, W, Cin = x_nhwc.shape
    Cout = w_eff.shape[-1]
    WCin, WCout = W * Cin, W * Cout
    # Note: layout is lane-dense when W*Cin and W*Cout are multiples of 128
    # (true here: 128 / 256); other maxima still work but with masked stores.

    x2 = x_nhwc.reshape(N, H, WCin)                          # lane-fold (free)
    wb = _fold_weight_im2col(w_eff, W).astype(compute_dtype)  # (3*WCin, WCout)
    bb = jnp.tile(b_eff.astype(jnp.float32), W).reshape(1, WCout)

    cost = pl.CostEstimate(
        flops=2 * N * H * KH * WCin * WCout,
        transcendentals=0,
        bytes_accessed=(N * H * WCin * 4
                        + KH * WCin * WCout * jnp.dtype(compute_dtype).itemsize
                        + WCout * 4 + N * H * WCout * 4))

    out = pl.pallas_call(
        _im2col_conv_kernel,
        out_shape=jax.ShapeDtypeStruct((N, H, WCout), out_dtype),
        # Whole (tiny) problem in one step: avoids per-step pipeline overhead
        # that dominates at this size.  For the large-shape TODO path, grid
        # over (N, H-tiles) with 'parallel' semantics and a constant-index
        # weight BlockSpec instead.
        grid=(1,),
        in_specs=[
            pl.BlockSpec((N, H, WCin), lambda i: (0, 0, 0)),
            pl.BlockSpec((KH * WCin, WCout), lambda i: (0, 0)),
            pl.BlockSpec((1, WCout), lambda i: (0, 0)),
        ],
        out_specs=pl.BlockSpec((N, H, WCout), lambda i: (0, 0, 0)),
        compiler_params=pltpu.CompilerParams(
            dimension_semantics=("arbitrary",)),
        cost_estimate=cost,
    )(x2, wb, bb)
    return out.reshape(N, H, W, Cout)


# ---------------------------------------------------------------------------
# SliceOp analogue
# ---------------------------------------------------------------------------
class SliceConv2dOp:
    """JAX/Pallas analogue of SliceOp specialised to a sliceable 3x3 conv.

    The super-kernel weight is allocated at the max candidate widths; each
    forward selects candidates via a multi-hot mask, slices weights/input
    channels, applies conv2d, and reduces with `reduction` ('sum' default).
    """

    def __init__(self, candidates, reduction="sum", return_mask=False,
                 key=None, seed=0, compute_dtype=jnp.bfloat16):
        if reduction not in ("sum", "mean"):
            # TODO(synk): reduction='none'/'concat' return per-candidate lists;
            # only 'sum'/'mean' fold into a single kernel launch here.
            raise NotImplementedError(
                f"reduction={reduction!r} not supported by the fused fold")
        self.candidates = list(candidates)      # [(in_channels, out_channels)]
        self.reduction = reduction
        self.return_mask = return_mask
        self.compute_dtype = compute_dtype
        self._key = key if key is not None else "SliceOp1"

        self.cin_max = max(c for c, _ in self.candidates)
        self.cout_max = max(c for _, c in self.candidates)

        k0, k1 = jax.random.split(jax.random.PRNGKey(seed))
        fan_in = self.cin_max * KH * KW
        self.weight = (jax.random.normal(
            k0, (KH, KW, self.cin_max, self.cout_max), jnp.float32)
            / np.sqrt(fan_in))
        self.bias = jax.random.normal(k1, (self.cout_max,), jnp.float32) * 0.1

        # Precomputed candidate-mask basis: slice/zero-pad of candidate j is a
        # rank-1 (in x out) 0/1 mask; the per-forward combination is a single
        # contraction with sel_mask instead of a Python loop of tiny XLA ops.
        cin_idx = np.arange(self.cin_max)
        cout_idx = np.arange(self.cout_max)
        in_basis = np.stack([(cin_idx < c).astype(np.float32)
                             for c, _ in self.candidates])
        out_basis = np.stack([(cout_idx < c).astype(np.float32)
                              for _, c in self.candidates])
        self._w_mask_basis = jnp.asarray(in_basis[:, :, None]
                                         * out_basis[:, None, :])  # (J,Cin,Cout)
        self._b_mask_basis = jnp.asarray(out_basis)                # (J,Cout)

    def _effective_params(self, sel_mask):
        """Fold 'slice -> zero-pad -> sum over selected candidates' into one
        masked weight/bias (exact, since conv is linear in the weight)."""
        w_mask = jnp.einsum("j,jio->io", sel_mask, self._w_mask_basis)
        b_mask = sel_mask @ self._b_mask_basis
        if self.reduction == "mean":
            denom = jnp.maximum(jnp.sum(sel_mask), 1.0)
            w_mask = w_mask / denom
            b_mask = b_mask / denom
        w_eff = self.weight * w_mask[None, None, :, :]
        b_eff = self.bias * b_mask
        return w_eff, b_eff

    def __call__(self, x_nhwc, sel_mask):
        w_eff, b_eff = self._effective_params(sel_mask)
        out = _sliced_conv_pallas(x_nhwc, w_eff, b_eff,
                                  compute_dtype=self.compute_dtype)
        if self.return_mask:
            return out, sel_mask
        return out


# ---------------------------------------------------------------------------
# Pure-JAX reference: per-candidate sliced conv, zero-pad, sum.
# ---------------------------------------------------------------------------
def _reference(op, x_nhwc, sel_mask, quantize_dtype=None):
    x = x_nhwc
    w_full = op.weight
    if quantize_dtype is not None:
        # Mirror the kernel's operand rounding (bf16 products are exact in f32;
        # only the f32 summation order differs).
        x = x.astype(quantize_dtype).astype(jnp.float32)
        w_full = w_full.astype(quantize_dtype).astype(jnp.float32)
    out = None
    for j, (cin, cout) in enumerate(op.candidates):
        w = w_full[:, :, :cin, :cout]
        b = op.bias[:cout]
        y = lax.conv_general_dilated(
            x[..., :cin], w, window_strides=(1, 1), padding="SAME",
            dimension_numbers=("NHWC", "HWIO", "NHWC")) + b
        y = jnp.pad(y, ((0, 0), (0, 0), (0, 0), (0, op.cout_max - cout)))
        y = sel_mask[j] * y
        out = y if out is None else out + y
    if op.reduction == "mean":
        out = out / jnp.maximum(jnp.sum(sel_mask), 1.0)
    return out


if __name__ == "__main__":
    N, H, W = 2, 16, 16
    candidates = [(4, 8), (8, 16)]   # (in_channels, out_channels) widths
    op = SliceConv2dOp(candidates, reduction="sum", return_mask=True, seed=0)

    key = jax.random.PRNGKey(0)
    # NCHW (PyTorch convention) -> NHWC for the kernel.
    x_nchw = jax.random.normal(key, (N, op.cin_max, H, W), jnp.float32)
    x_nhwc = jnp.transpose(x_nchw, (0, 2, 3, 1))

    # multi-hot candidate selection (both selected -> exercises 'sum' reduction)
    sel_mask = jnp.array([1.0, 1.0], jnp.float32)

    # jit the whole forward so the (already einsum-collapsed) wrapper glue
    # fuses with the kernel launch instead of running as separate tiny XLA ops.
    fwd = jax.jit(op.__call__)
    out, mask = fwd(x_nhwc, sel_mask)
    out = jax.block_until_ready(out)

    # Tight check vs. a reference using the same bf16-rounded operands
    # (bf16 x bf16 products are exact in f32, so only sum order differs).
    ref_q = _reference(op, x_nhwc, sel_mask, quantize_dtype=op.compute_dtype)
    np.testing.assert_allclose(np.asarray(out), np.asarray(ref_q),
                               rtol=1e-4, atol=1e-4)
    # Loose sanity check vs. the full-f32 reference (bf16 operand rounding).
    ref_f32 = _reference(op, x_nhwc, sel_mask)
    np.testing.assert_allclose(np.asarray(out), np.asarray(ref_f32),
                               rtol=5e-2, atol=5e-2)
    assert out.shape == (N, H, W, op.cout_max)
    print("KERNEL_OK")
</pallas_src>

<mosaic_0001>
module attributes {stable_mosaic.version = 11 : i64} {
  func.func @_im2col_conv_kernel(%arg0: i32, %arg1: memref<2x16x128xf32, #tpu.memory_space<vmem>>, %arg2: memref<384x256xbf16, #tpu.memory_space<vmem>>, %arg3: memref<1x256xf32, #tpu.memory_space<vmem>>, %arg4: memref<2x16x256xf32, #tpu.memory_space<vmem>>) attributes {dimension_semantics = [#tpu.dimension_semantics<arbitrary>], iteration_bounds = array<i64: 1>, scalar_prefetch = 0 : i64, scratch_operands = 0 : i64, tpu.core_type = #tpu.core_type<tc>, window_params = [{pipeline_mode = #tpu.pipeline_mode<synchronous>, transform_indices = @transform_0, window_bounds = array<i64: 2, 16, 128>}, {pipeline_mode = #tpu.pipeline_mode<synchronous>, transform_indices = @transform_1, window_bounds = array<i64: 384, 256>}, {pipeline_mode = #tpu.pipeline_mode<synchronous>, transform_indices = @transform_2, window_bounds = array<i64: 1, 256>}, {pipeline_mode = #tpu.pipeline_mode<synchronous>, transform_indices = @transform_3, window_bounds = array<i64: 2, 16, 256>}]} {
    %c0 = arith.constant 0 : index
    %c0_0 = arith.constant 0 : index
    %c0_1 = arith.constant 0 : index
    %0 = vector.load %arg1[%c0, %c0_0, %c0_1] : memref<2x16x128xf32, #tpu.memory_space<vmem>>, vector<2x16x128xf32>
    %cst = arith.constant 0.000000e+00 : f32
    %1 = vector.broadcast %cst : f32 to vector<2x1x128xf32>
    %2 = vector.extract_strided_slice %0 {offsets = [0, 0, 0], sizes = [2, 15, 128], strides = [1, 1, 1]} : vector<2x16x128xf32> to vector<2x15x128xf32>
    %3 = tpu.concatenate %1, %2 in 1 : vector<2x1x128xf32>, vector<2x15x128xf32> -> vector<2x16x128xf32>
    %4 = vector.extract_strided_slice %0 {offsets = [0, 1, 0], sizes = [2, 15, 128], strides = [1, 1, 1]} : vector<2x16x128xf32> to vector<2x15x128xf32>
    %5 = tpu.concatenate %4, %1 in 1 : vector<2x15x128xf32>, vector<2x1x128xf32> -> vector<2x16x128xf32>
    %6 = tpu.concatenate %3, %0, %5 in 2 : vector<2x16x128xf32>, vector<2x16x128xf32>, vector<2x16x128xf32> -> vector<2x16x384xf32>
    %7 = vector.shape_cast %6 : vector<2x16x384xf32> to vector<32x384xf32>
    %8 = arith.truncf %7 : vector<32x384xf32> to vector<32x384xbf16>
    %c0_2 = arith.constant 0 : index
    %c0_3 = arith.constant 0 : index
    %9 = vector.load %arg2[%c0_2, %c0_3] : memref<384x256xbf16, #tpu.memory_space<vmem>>, vector<384x256xbf16>
    %cst_4 = arith.constant dense<0.000000e+00> : vector<32x256xf32>
    %10 = tpu.matmul %8, %9, %cst_4 {dimension_numbers = #tpu.dot_dimension_numbers<[1], [0], [0], [1], [0, 0, 1, 1], [], []>} : vector<32x384xbf16>, vector<384x256xbf16>, vector<32x256xf32> -> vector<32x256xf32>
    %c0_5 = arith.constant 0 : index
    %c0_6 = arith.constant 0 : index
    %11 = vector.load %arg3[%c0_5, %c0_6] : memref<1x256xf32, #tpu.memory_space<vmem>>, vector<1x256xf32>
    %12 = vector.broadcast %11 : vector<1x256xf32> to vector<32x256xf32>
    %13 = arith.addf %10, %12 : vector<32x256xf32>
    %14 = vector.shape_cast %13 : vector<32x256xf32> to vector<2x16x256xf32>
    %c0_7 = arith.constant 0 : index
    %c0_8 = arith.constant 0 : index
    %c0_9 = arith.constant 0 : index
    %15 = vector.load %arg4[%c0_7, %c0_8, %c0_9] : memref<2x16x256xf32, #tpu.memory_space<vmem>>, vector<2x16x256xf32>
    tpu.vector_store %arg4[%c0_7, %c0_8, %c0_9], %14 {strides = array<i32>} : memref<2x16x256xf32, #tpu.memory_space<vmem>>, vector<2x16x256xf32>,
    return
  }
  func.func @transform_0(%arg0: i32) -> (i32, i32, i32) {
    %c0_i32 = arith.constant 0 : i32
    %c0_i32_0 = arith.constant 0 : i32
    %c0_i32_1 = arith.constant 0 : i32
    %c0_i32_2 = arith.constant 0 : i32
    return %c0_i32, %c0_i32_0, %c0_i32_1 : i32, i32, i32
  }
  func.func @transform_1(%arg0: i32) -> (i32, i32) {
    %c0_i32 = arith.constant 0 : i32
    %c0_i32_0 = arith.constant 0 : i32
    %c0_i32_1 = arith.constant 0 : i32
    return %c0_i32, %c0_i32_0 : i32, i32
  }
  func.func @transform_2(%arg0: i32) -> (i32, i32) {
    %c0_i32 = arith.constant 0 : i32
    %c0_i32_0 = arith.constant 0 : i32
    %c0_i32_1 = arith.constant 0 : i32
    return %c0_i32, %c0_i32_0 : i32, i32
  }
  func.func @transform_3(%arg0: i32) -> (i32, i32, i32) {
    %c0_i32 = arith.constant 0 : i32
    %c0_i32_0 = arith.constant 0 : i32
    %c0_i32_1 = arith.constant 0 : i32
    %c0_i32_2 = arith.constant 0 : i32
    return %c0_i32, %c0_i32_0, %c0_i32_1 : i32, i32, i32
  }
}

</mosaic_0001>

<bundles_post_ra>
// kernel: mul.3
= control target key start
LH: loop header
LB: loop body
LE: loop exit
PB: predicated region body
PF: predicated region fallthrough
CT: control target
= control target key end

     0   :  { %s34_s0 = inlined_call_operand.vmem [shape: f32[16], index: 0, kind: input, shape index: {}]   ;;  %s35_s1 = inlined_call_operand.vmem [shape: f32[16], index: 1, kind: input, shape index: {}]   ;;  %s36_s2 = inlined_call_operand.vmem [shape: f32[16], index: 2, kind: output, shape index: {}]  }
   0x1   :  { %v3_v0 = vld [vmem:[%s34_s0] sm:$0x1] }
   0x2   :  { %v4_v1 = vld [vmem:[%s35_s1] sm:$0x1] }
   0x3   :  { %v7_v2 = vmul.f32 %v4_v1, %v3_v0 }
   0x5   :  { %9 = vst [vmem:[%s36_s2] sm:$0x1] %v7_v2 }

// kernel: tile.8
= control target key start
LH: loop header
LB: loop body
LE: loop exit
PB: predicated region body
PF: predicated region fallthrough
CT: control target
= control target key end

     0   :  { %s28_s0 = inlined_call_operand.vmem [shape: f32[16], index: 0, kind: input, shape index: {}]   ;;  %s29_s1 = inlined_call_operand.vmem [shape: f32[16,16], index: 1, kind: output, shape index: {}]  }
   0x1   :  { %v4_v0 = vld [vmem:[%s28_s0] ss:$0 sm:$0xff] }
   0x2   :  { %5 = vst [vmem:[%s29_s1] sm:$0xff] %v4_v0  ;;  %8 = vst [vmem:[%s29_s1 + $0x8] sm:$0xff] %v4_v0 }

// kernel: tile.9
= control target key start
LH: loop header
LB: loop body
LE: loop exit
PB: predicated region body
PF: predicated region fallthrough
CT: control target
= control target key end

     0   :  { %s7_s6 = smov 3  ;;  %s21_s9 = smov 3  ;;  %vm4_vm0 = vcmask 130048   ;;  %vm11_vm1 = vcmask 1048448   ;;  %vm18_vm2 = vcmask 917248   ;;  %vm25_vm3 = vcmask 786048   ;;  %s128_s0 = inlined_call_operand.vmem [shape: f32[16,16], index: 0, kind: input, shape index: {}]   ;;  %s129_s1 = inlined_call_operand.vmem [shape: f32[1,256], index: 1, kind: output, shape index: {}]  }
   0x1   :  { %v66_v0 = vld [vmem:[%s128_s0 + $0x7] ss:$8 sm:%s7_s6]   ;;  %s81_s10 = smov 112   ;;  %v68_v1 = vld [vmem:[%s128_s0 + $0x5] ss:$8 sm:%s21_s9]   ;;  %s14_s13 = smov 3 }
   0x2   :  { %9 = vrot.lane.b32.xlu0 %v66_v0, %s81_s10  ;;  %s82_s14 = smov 80   ;;  %v67_v2 = vld [vmem:[%s128_s0 + $0x6] ss:$8 sm:%s14_s13]   ;;  %s28_s17 = smov 3  ;;  %vm32_vm4 = vcmask 654848   ;;  %vm39_vm5 = vcmask 523648  }
   0x3   :  { %23 = vrot.lane.b32.xlu1 %v68_v1, %s82_s14  ;;  %v69_v3 = vld [vmem:[%s128_s0 + $0x4] ss:$8 sm:%s28_s17]   ;;  %s35_s20 = smov 3  ;;  %s42_s21 = smov 3  ;;  %vm46_vm6 = vcmask 392448   ;;  %vm53_vm7 = vcmask 261248  }
   0x4   :  { %s83_s22 = smov 96   ;;  %s84_s23 = smov 64   ;;  %v70_v4 = vld [vmem:[%s128_s0 + $0x3] ss:$8 sm:%s35_s20]   ;;  %v71_v5 = vld [vmem:[%s128_s0 + $0x2] ss:$8 sm:%s42_s21]  }
   0x5   :  { %s2_s26 = smov 3  ;;  %s49_s29 = smov 3 }
   0x6   :  { %16 = vrot.lane.b32.xlu0 %v67_v2, %s83_s22  ;;  %v3_v6 = vld [vmem:[%s128_s0] ss:$8 sm:%s2_s26]   ;;  %s85_s3 = smov 48   ;;  %s86_s4 = smov 32  }
   0x7   :  { %30 = vrot.lane.b32.xlu1 %v69_v3, %s84_s23  ;;  %5 = vst.msk [vmem:[#allocation0] ss:$8 sm:$0x3] %vm4_vm0, %v3_v6   ;;  %v72_v7 = vld [vmem:[%s128_s0 + $0x1] ss:$8 sm:%s49_s29]   ;;  %s87_s0 = smov 16  }
   0xa   :  { %37 = vrot.lane.b32.xlu0 %v70_v4, %s85_s3 }
   0xb   :  { %44 = vrot.lane.b32.xlu1 %v71_v5, %s86_s4 }
   0xe   :  { %51 = vrot.lane.b32.xlu0 %v72_v7, %s87_s0 }
  0x74   :  { %v10_v8 = vpop.permute.xlu0 %9  }
  0x75   :  { %12 = vst.msk [vmem:[#allocation0] ss:$8 sm:$0x3] %vm11_vm1, %v10_v8   ;;  %v24_v9 = vpop.permute.xlu1 %23  }
  0x78   :  { %v17_v10 = vpop.permute.xlu0 %16  }
  0x79   :  { %19 = vst.msk [vmem:[#allocation0] ss:$8 sm:$0x3] %vm18_vm2, %v17_v10   ;;  %v31_v11 = vpop.permute.xlu1 %30  }
  0x7a   :  { %26 = vst.msk [vmem:[#allocation0] ss:$8 sm:$0x3] %vm25_vm3, %v24_v9  }
  0x7b   :  { %33 = vst.msk [vmem:[#allocation0] ss:$8 sm:$0x3] %vm32_vm4, %v31_v11  }
  0x7c   :  { %v38_v12 = vpop.permute.xlu0 %37  }
  0x7d   :  { %40 = vst.msk [vmem:[#allocation0] ss:$8 sm:$0x3] %vm39_vm5, %v38_v12   ;;  %v45_v13 = vpop.permute.xlu1 %44  }
  0x7e   :  { %47 = vst.msk [vmem:[#allocation0] ss:$8 sm:$0x3] %vm46_vm6, %v45_v13  }
  0x80   :  { %v52_v14 = vpop.permute.xlu0 %51  }
  0x81   :  { %54 = vst.msk [vmem:[#allocation0] ss:$8 sm:$0x3] %vm53_vm7, %v52_v14  }
  0x88   :  { %v58_v15 = vld [vmem:[#allocation0] sm:$0x1]  ;;  %v62_v16 = vld [vmem:[#allocation0 + $0x8] sm:$0x1] }
  0x89   :  { %60 = vst [vmem:[%s129_s1] sm:$0x1] %v58_v15  ;;  %73 = vst [vmem:[%s129_s1 + $0x1] sm:$0x1] %v62_v16 }

// kernel: a_call__.1
= control target key start
LH: loop header
LB: loop body
LE: loop exit
PB: predicated region body
PF: predicated region fallthrough
CT: control target
= control target key end

     0   :  { %v625_v1 = vmov 0   ;;  %vm36_vm0 = vcmask 1046528   ;;  %vm626_vm1 = vmmov 1   ;;  %vm23_vm3 = vcmask 1040384   ;;  %s845_s1 = inlined_call_operand.vmem [shape: bf16[384,256], index: 1, kind: input, shape index: {}]   ;;  %s846_s0 = inlined_call_operand.vmem [shape: f32[2,16,128], index: 0, kind: input, shape index: {}]   ;;  %s847_s2 = inlined_call_operand.vmem [shape: f32[1,256], index: 2, kind: input, shape index: {}]   ;;  %s848_s3 = inlined_call_operand.vmem [shape: f32[2,16,256], index: 3, kind: output, shape index: {}]  }
   0x1   :  { %v553_v0 = vld [vmem:[%s845_s1 + $0x4] ss:$8 sps:$4 sm:$0xff]   ;;  %440 = vmatprep.mubr.bf16.mxu0 %v625_v1  ;;  %v555_v2 = vld [vmem:[%s845_s1] ss:$8 sps:$4 sm:$0xff]   ;;  %v556_v3 = vld [vmem:[%s845_s1 + $0x14] ss:$8 sps:$4 sm:$0xff]  }
   0x2   :  { %355 = vmatprep.subr.bf16.mxu1 %v553_v0  ;;  %v558_v4 = vld [vmem:[%s845_s1 + $0x10] ss:$8 sps:$4 sm:$0xff]   ;;  %v559_v5 = vld [vmem:[%s845_s1 + $0x24] ss:$8 sps:$4 sm:$0xff]   ;;  %v561_v6 = vld [vmem:[%s845_s1 + $0x20] ss:$8 sps:$4 sm:$0xff]  }
   0x3   :  { %356 = vmatpush1.bf16.msra.mxu1 %v555_v2  ;;  %v562_v7 = vld [vmem:[%s845_s1 + $0x34] ss:$8 sps:$4 sm:$0xff]   ;;  %v564_v8 = vld [vmem:[%s845_s1 + $0x30] ss:$8 sps:$4 sm:$0xff]   ;;  %v577_v9 = vld [vmem:[%s845_s1 + $0x104] ss:$8 sps:$4 sm:$0xff]  }
   0x4   :  { %357 = vmatprep.subr.bf16.mxu1 %v556_v3  ;;  %v565_v10 = vld [vmem:[%s845_s1 + $0x44] ss:$8 sps:$4 sm:$0xff]   ;;  %v581_v11 = vld [vmem:[%s845_s1 + $0x100] ss:$8 sps:$4 sm:$0xff]   ;;  %408 = vmatprep.subr.bf16.mxu0 %v577_v9  ;;  %v583_v12 = vld [vmem:[%s845_s1 + $0x114] ss:$8 sps:$4 sm:$0xff]  }
   0x5   :  { %409 = vmatpush1.bf16.msra.mxu0 %v581_v11  ;;  %v567_v13 = vld [vmem:[%s845_s1 + $0x40] ss:$8 sps:$4 sm:$0xff]   ;;  %v568_v14 = vld [vmem:[%s845_s1 + $0x54] ss:$8 sps:$4 sm:$0xff]   ;;  %v587_v15 = vld [vmem:[%s845_s1 + $0x110] ss:$8 sps:$4 sm:$0xff]  }
   0x6   :  { %410 = vmatprep.subr.bf16.mxu0 %v583_v12  ;;  %v589_v16 = vld [vmem:[%s845_s1 + $0x124] ss:$8 sps:$4 sm:$0xff]   ;;  %v570_v17 = vld [vmem:[%s845_s1 + $0x50] ss:$8 sps:$4 sm:$0xff]   ;;  %v593_v18 = vld [vmem:[%s845_s1 + $0x120] ss:$8 sps:$4 sm:$0xff]   ;;  %v105_v12 = vlaneseq }
   0x7   :  { %358 = vmatpush1.bf16.msra.mxu1 %v558_v4  ;;  %v595_v19 = vld [vmem:[%s845_s1 + $0x134] ss:$8 sps:$4 sm:$0xff]   ;;  %v571_v20 = vld [vmem:[%s845_s1 + $0x64] ss:$8 sps:$4 sm:$0xff]   ;;  %v599_v21 = vld [vmem:[%s845_s1 + $0x130] ss:$8 sps:$4 sm:$0xff]  }
   0x8   :  { %359 = vmatprep.subr.bf16.mxu1 %v559_v5  ;;  %v573_v22 = vld [vmem:[%s845_s1 + $0x60] ss:$8 sps:$4 sm:$0xff]   ;;  %v601_v23 = vld [vmem:[%s845_s1 + $0x144] ss:$8 sps:$4 sm:$0xff]   ;;  %v574_v24 = vld [vmem:[%s845_s1 + $0x74] ss:$8 sps:$4 sm:$0xff]  }
   0x9   :  { %411 = vmatpush1.bf16.msra.mxu0 %v587_v15  ;;  %v576_v25 = vld [vmem:[%s845_s1 + $0x70] ss:$8 sps:$4 sm:$0xff]   ;;  %v605_v26 = vld [vmem:[%s845_s1 + $0x140] ss:$8 sps:$4 sm:$0xff]   ;;  %v607_v27 = vld [vmem:[%s845_s1 + $0x154] ss:$8 sps:$4 sm:$0xff]  }
   0xa   :  { %412 = vmatprep.subr.bf16.mxu0 %v589_v16  ;;  %v579_v28 = vld [vmem:[%s845_s1 + $0x84] ss:$8 sps:$4 sm:$0xff]   ;;  %v611_v29 = vld [vmem:[%s845_s1 + $0x150] ss:$8 sps:$4 sm:$0xff]   ;;  %v582_v30 = vld [vmem:[%s845_s1 + $0x80] ss:$8 sps:$4 sm:$0xff]  }
   0xb   :  { %360 = vmatpush1.bf16.msra.mxu1 %v561_v6  ;;  %v613_v31 = vld [vmem:[%s845_s1 + $0x164] ss:$8 sps:$4 sm:$0xff]   ;;  %v585_v32 = vld [vmem:[%s845_s1 + $0x94] ss:$8 sps:$4 sm:$0xff]   ;;  %v617_v35 = vld [vmem:[%s845_s1 + $0x160] ss:$8 sps:$4 sm:$0xff]  }
   0xc   :  { %361 = vmatprep.subr.bf16.mxu1 %v562_v7  ;;  %v15_v33 = vld [vmem:[%s846_s0] sm:$0xff]  ;;  %v16_v34 = vld [vmem:[%s846_s0 + $0x8] sm:$0xff]  ;;  %v588_v39 = vld [vmem:[%s845_s1 + $0x90] ss:$8 sps:$4 sm:$0xff]   ;;  %v106_v15 = vshrl.u32 %v105_v12, 7 }
   0xd   :  { %413 = vmatpush1.bf16.msra.mxu0 %v593_v18  ;;  %v37_v36 = vrot.slane %v15_v33, 1  ;;  %v38_v37 = vrot.slane %v16_v34, 1  ;;  %v50_v38 = vpack.c.bf16 %v16_v34, %v15_v33  ;;  %v619_v40 = vld [vmem:[%s845_s1 + $0x174] ss:$8 sps:$4 sm:$0xff]   ;;  %v591_v41 = vld [vmem:[%s845_s1 + $0xa4] ss:$8 sps:$4 sm:$0xff]   ;;  %vm780_vm2 = vmpackc.low %vm36_vm0, %vm626_vm1 }
   0xe   :  { %414 = vmatprep.subr.bf16.mxu0 %v595_v19  ;;  %v623_v42 = vld [vmem:[%s845_s1 + $0x170] ss:$8 sps:$4 sm:$0xff]   ;;  %v594_v44 = vld [vmem:[%s845_s1 + $0xa0] ss:$8 sps:$4 sm:$0xff]   ;;  %v597_v47 = vld [vmem:[%s845_s1 + $0xb4] ss:$8 sps:$4 sm:$0xff]  }
   0xf   :  { %362 = vmatpush1.bf16.msra.mxu1 %v564_v8  ;;  %387 = vmatprep.mubr.bf16.mxu1 %v50_v38  ;;  %v39_v43 = vsel %vm36_vm0, %v37_v36, %v38_v37  ;;  %v17_v45 = vld [vmem:[%s846_s0 + $0x10] sm:$0xff]  ;;  %v18_v46 = vld [vmem:[%s846_s0 + $0x18] sm:$0xff]  ;;  %v603_v53 = vld [vmem:[%s845_s1 + $0xc4] ss:$8 sps:$4 sm:$0xff]   ;;  %v24_v61 = vrot.slane %v15_v33, 7  ;;  %v25_v62 = vrot.slane %v16_v34, 7 }
  0x10   :  { %363 = vmatprep.subr.bf16.mxu1 %v565_v10  ;;  %v530_v48 = vpack.c.bf16 %v38_v37, %v39_v43  ;;  %v40_v50 = vrot.slane %v17_v45, 1  ;;  %v41_v51 = vrot.slane %v18_v46, 1  ;;  %v600_v52 = vld [vmem:[%s845_s1 + $0xb0] ss:$8 sps:$4 sm:$0xff]   ;;  %v606_v55 = vld [vmem:[%s845_s1 + $0xc0] ss:$8 sps:$4 sm:$0xff]   ;;  %vm521_vm4 = vmneg %vm23_vm3  ;;  %v53_v5 = vpack.c.bf16 %v18_v46, %v17_v45 }
  0x11   :  { %415 = vmatpush1.bf16.msra.mxu0 %v599_v21  ;;  %v609_v56 = vld [vmem:[%s845_s1 + $0xd4] ss:$8 sps:$4 sm:$0xff]   ;;  %v612_v58 = vld [vmem:[%s845_s1 + $0xd0] ss:$8 sps:$4 sm:$0xff]   ;;  %v615_v59 = vld [vmem:[%s845_s1 + $0xe4] ss:$8 sps:$4 sm:$0xff]  }
  0x12   :  { %416 = vmatprep.subr.bf16.mxu0 %v601_v23  ;;  %v42_v54 = vsel %vm36_vm0, %v40_v50, %v41_v51  ;;  %v618_v60 = vld [vmem:[%s845_s1 + $0xe0] ss:$8 sps:$4 sm:$0xff]   ;;  %v621_v63 = vld [vmem:[%s845_s1 + $0xf4] ss:$8 sps:$4 sm:$0xff]   ;;  %v624_v0 = vld [vmem:[%s845_s1 + $0xf0] ss:$8 sps:$4 sm:$0xff]  }
  0x13   :  { %364 = vmatpush1.bf16.msra.mxu1 %v567_v13  ;;  %v533_v57 = vpack.c.bf16 %v41_v51, %v42_v54  ;;  %vm522_vm5 = vmpackc.low %vm626_vm1, %vm521_vm4  ;;  %v27_v3 = vrot.slane %v17_v45, 7  ;;  %v28_v4 = vrot.slane %v18_v46, 7  ;;  %v107_v18 = vsub.s32 0, %v106_v15  ;;  %v103_v19 = vld [vmem:[%s847_s2] sm:$0x3] }
  0x14   :  { %365 = vmatprep.subr.bf16.mxu1 %v568_v14 }
  0x15   :  { %417 = vmatpush1.bf16.msra.mxu0 %v605_v26  ;;  %v29_v6 = vsel %vm23_vm3, %v27_v3, %v28_v4  ;;  %v108_v21 = vrot.slane %v103_v19, %v107_v18 }
  0x16   :  { %418 = vmatprep.subr.bf16.mxu0 %v607_v27  ;;  %v527_v7 = vpack.c.bf16 %v29_v6, %v27_v3 }
  0x17   :  { %366 = vmatpush1.bf16.msra.mxu1 %v570_v17 }
  0x18   :  { %367 = vmatprep.subr.bf16.mxu1 %v571_v20  ;;  %v111_v20 = vsub.s32 1, %v106_v15 }
  0x19   :  { %419 = vmatpush1.bf16.msra.mxu0 %v611_v29 }
  0x1a   :  { %420 = vmatprep.subr.bf16.mxu0 %v613_v31 }
  0x1b   :  { %368 = vmatpush1.bf16.msra.mxu1 %v573_v22  ;;  %v112_v22 = vrot.slane %v103_v19, %v111_v20 }
  0x1c   :  { %369 = vmatprep.subr.bf16.mxu1 %v574_v24 }
  0x1d   :  { %421 = vmatpush1.bf16.msra.mxu0 %v617_v35 }
  0x1e   :  { %422 = vmatprep.subr.bf16.mxu0 %v619_v40 }
  0x1f   :  { %370 = vmatpush1.bf16.msra.mxu1 %v576_v25 }
  0x20   :  { %371 = vmatprep.subr.bf16.mxu1 %v579_v28 }
  0x21   :  { %423 = vmatpush1.bf16.msra.mxu0 %v623_v42 }
  0x23   :  { %372 = vmatpush1.bf16.msra.mxu1 %v582_v30 }
  0x24   :  { %373 = vmatprep.subr.bf16.mxu1 %v585_v32  ;;  %531 = vmatmul.mubr.msk.bf16.vlgmr.msra.gmra.mrb[0].mxu0 %vm780_vm2, %v530_v48 }
  0x25   :  { %450 = vmatprep.mubr.bf16.mxu0 %v625_v1  ;;  %v26_v1 = vsel %vm23_vm3, %v24_v61, %v25_v62 }
  0x26   :  { %v523_v2 = vpack.c.bf16 %v26_v1, %v24_v61 }
  0x27   :  { %374 = vmatpush1.bf16.msra.mxu1 %v588_v39 }
  0x28   :  { %375 = vmatprep.subr.bf16.mxu1 %v591_v41 }
  0x2b   :  { %376 = vmatpush1.bf16.msra.mxu1 %v594_v44 }
  0x2c   :  { %377 = vmatprep.subr.bf16.mxu1 %v597_v47  ;;  %534 = vmatmul.mubr.msk.bf16.gmra.mrb[4].mxu0 %vm780_vm2, %v533_v57 }
  0x2f   :  { %378 = vmatpush1.bf16.msra.mxu1 %v600_v52 }
  0x30   :  { %379 = vmatprep.subr.bf16.mxu1 %v603_v53 }
  0x33   :  { %380 = vmatpush1.bf16.msra.mxu1 %v606_v55 }
  0x34   :  { %381 = vmatprep.subr.bf16.mxu1 %v609_v56 }
  0x37   :  { %382 = vmatpush1.bf16.msra.mxu1 %v612_v58 }
  0x38   :  { %383 = vmatprep.subr.bf16.mxu1 %v615_v59 }
  0x3b   :  { %384 = vmatpush1.bf16.msra.mxu1 %v618_v60 }
  0x3c   :  { %385 = vmatprep.subr.bf16.mxu1 %v621_v63 }
  0x3f   :  { %386 = vmatpush1.bf16.msra.mxu1 %v624_v0 }
  0x42   :  { %524 = vmatmul.mubr.msk.bf16.vlgmr.msra.gmra.mrb[0].mxu1 %vm522_vm5, %v523_v2 }
  0x43   :  { %397 = vmatprep.mubr.bf16.mxu1 %v53_v5 }
  0x4a   :  { %528 = vmatmul.mubr.msk.bf16.gmra.mrb[4].mxu1 %vm522_vm5, %v527_v7 }
  0xf7   :  { %v442_v8 = vpop.f32.mrb[0].mxu0 }
  0xf8   :  { %v444_v9 = vpop.f32.mrb[1].mxu0 }
  0xf9   :  { %v446_v10 = vpop.f32.mrb[2].mxu0 }
  0xfa   :  { %v448_v11 = vpop.f32.mrb[3].mxu0 }
  0xff   :  { %v452_v13 = vpop.f32.mrb[4].mxu0 }
 0x100   :  { %v454_v14 = vpop.f32.mrb[5].mxu0 }
 0x101   :  { %v456_v16 = vpop.f32.mrb[6].mxu0 }
 0x102   :  { %v458_v17 = vpop.f32.mrb[7].mxu0 }
 0x115   :  { %v389_v23 = vpop.f32.mrb[0].mxu1 }
 0x116   :  { %v390_v24 = vadd.f32 %v389_v23, %v108_v21  ;;  %v391_v25 = vpop.f32.mrb[1].mxu1 }
 0x117   :  { %v392_v26 = vadd.f32 %v391_v25, %v112_v22  ;;  %v393_v27 = vpop.f32.mrb[2].mxu1 }
 0x118   :  { %v443_v28 = vadd.f32 %v442_v8, %v390_v24  ;;  %v394_v29 = vadd.f32 %v393_v27, %v108_v21  ;;  %v395_v30 = vpop.f32.mrb[3].mxu1 }
 0x119   :  { %v445_v31 = vadd.f32 %v444_v9, %v392_v26  ;;  %v396_v32 = vadd.f32 %v395_v30, %v112_v22 }
 0x11a   :  { %461 = vst [vmem:[%s848_s3] sm:$0xff] %v443_v28  ;;  %v447_v33 = vadd.f32 %v446_v10, %v394_v29 }
 0x11b   :  { %462 = vst [vmem:[%s848_s3 + $0x8] sm:$0xff] %v445_v31  ;;  %v449_v34 = vadd.f32 %v448_v11, %v396_v32 }
 0x11c   :  { %463 = vst [vmem:[%s848_s3 + $0x10] sm:$0xff] %v447_v33 }
 0x11d   :  { %464 = vst [vmem:[%s848_s3 + $0x18] sm:$0xff] %v449_v34  ;;  %v399_v35 = vpop.f32.mrb[4].mxu1 }
 0x11e   :  { %v400_v36 = vadd.f32 %v399_v35, %v108_v21  ;;  %v401_v37 = vpop.f32.mrb[5].mxu1 }
 0x11f   :  { %v402_v38 = vadd.f32 %v401_v37, %v112_v22  ;;  %v403_v39 = vpop.f32.mrb[6].mxu1 }
 0x120   :  { %v453_v40 = vadd.f32 %v452_v13, %v400_v36  ;;  %v404_v41 = vadd.f32 %v403_v39, %v108_v21  ;;  %v405_v42 = vpop.f32.mrb[7].mxu1 }
 0x121   :  { %v455_v43 = vadd.f32 %v454_v14, %v402_v38  ;;  %v406_v44 = vadd.f32 %v405_v42, %v112_v22 }
 0x122   :  { %465 = vst [vmem:[%s848_s3 + $0x20] sm:$0xff] %v453_v40  ;;  %v457_v45 = vadd.f32 %v456_v16, %v404_v41 }
 0x123   :  { %466 = vst [vmem:[%s848_s3 + $0x28] sm:$0xff] %v455_v43  ;;  %v459_v46 = vadd.f32 %v458_v17, %v406_v44 }
 0x124   :  { %467 = vst [vmem:[%s848_s3 + $0x30] sm:$0xff] %v457_v45 }
 0x125   :  { %468 = vst [vmem:[%s848_s3 + $0x38] sm:$0xff] %v459_v46 }

</bundles_post_ra>
